<compile_context>
chip_gen: v7x
topology: tpu7x:2x2x1
jax: 0.10.0
libtpu: 0.0.40
codegen_flags: <defaults>
</compile_context>

<pallas_src>
import jax
import jax.numpy as jnp
from jax.experimental import pallas as pl
from jax.experimental.pallas import tpu as pltpu

LANE = 128            # lane width (last dim of every tile)
SUBLANE = 8           # sublane granularity for f32
MAX_TILE_ROWS = 4096  # 4096 x 128 x 4B = 2 MiB per (rows,128) plane
SMALL_BATCH_THRESHOLD = 1 << 15  # below this, plain fused XLA is faster


def _cdiv(a, b):
    return -(-a // b)


def _symbolic23_kernel(p_ref, x_ref, o_ref):
    # p_ref: (8,) f32 in SMEM (scalar-prefetched), already p7-folded:
    #   [p0, p1, p2, p3*p7, p4*p7, p5, p6, p8]
    # x_ref: (2, tile_rows, 128) f32 in VMEM  -- x_ref[0] = x3, x_ref[1] = x4
    # o_ref: (tile_rows, 128) f32 in VMEM
    x3 = x_ref[0]
    x4 = x_ref[1]

    p0 = p_ref[0]
    p1 = p_ref[1]
    p2 = p_ref[2]
    q3 = p_ref[3]   # p3 * p7
    q4 = p_ref[4]   # p4 * p7
    p5 = p_ref[5]
    p6 = p_ref[6]
    p8 = p_ref[7]

    num = x3 * p0 + p1 + p2 * x4
    den = (x3 * q3 + q4 * x4) * (x3 * p5 + p6 * x4) + p8
    o_ref[...] = num / den  # exact f32 division (matches PyTorch numerics)


def _symbolic23_jnp(x, p):
    """Fused XLA path for small batches."""
    x3 = x[:, 3].astype(jnp.float32)
    x4 = x[:, 4].astype(jnp.float32)
    return (x3 * p[0] + p[1] + p[2] * x4) / (
        (x3 * p[3] + p[4] * x4) * (x3 * p[5] + p[6] * x4) * p[7] + p[8]
    )


def symbolic23_forward(x, p, *, force_pallas=False):
    """x: (B, F) float32 with F >= 5; p: (9,) float32. Returns (B,) float32."""
    B = x.shape[0]

    if not force_pallas and B < SMALL_BATCH_THRESHOLD:
        return _symbolic23_jnp(x, p)

    # Fold p7 into p3/p4 on the host (pure scalar work).
    p = p.astype(jnp.float32)
    p_folded = jnp.stack(
        [p[0], p[1], p[2], p[3] * p[7], p[4] * p[7], p[5], p[6], p[8]]
    )

    # One contiguous slice of the two used columns, then a single
    # transpose + pad + reshape into a feature-major lane-dense slab.
    xs = x[:, 3:5].astype(jnp.float32)          # (B, 2)

    rows_needed = max(SUBLANE, _cdiv(B, LANE))
    rows_needed = _cdiv(rows_needed, SUBLANE) * SUBLANE
    tile_rows = min(MAX_TILE_ROWS, rows_needed)
    n_tiles = _cdiv(rows_needed, tile_rows)
    total_rows = n_tiles * tile_rows
    padded = total_rows * LANE
    pad = padded - B

    packed = (
        jnp.pad(xs.T, ((0, 0), (0, pad)))       # (2, padded); pad value 0.0
        .reshape(2, total_rows, LANE)
    )

    out = pl.pallas_call(
        _symbolic23_kernel,
        out_shape=jax.ShapeDtypeStruct((total_rows, LANE), jnp.float32),
        grid_spec=pltpu.PrefetchScalarGridSpec(
            num_scalar_prefetch=1,
            grid=(n_tiles,),
            in_specs=[
                pl.BlockSpec((2, tile_rows, LANE), lambda i, p_ref: (0, i, 0)),
            ],
            out_specs=pl.BlockSpec((tile_rows, LANE), lambda i, p_ref: (i, 0)),
        ),
        compiler_params=pltpu.CompilerParams(
            dimension_semantics=("parallel",),
            vmem_limit_bytes=32 * 1024 * 1024,
        ),
    )(p_folded, packed)

    return out.reshape(-1)[:B]


def _reference(x, p):
    x3, x4 = x[:, 3], x[:, 4]
    return (x3 * p[0] + p[1] + p[2] * x4) / (
        (x3 * p[3] + p[4] * x4) * (x3 * p[5] + p[6] * x4) * p[7] + p[8]
    )


if __name__ == "__main__":
    # Deterministic parameters (from the module's __init__).
    p = jnp.array(
        [3.942978, -0.20499013, 1.0, 4.0139728, 1.0, 4.0139728, 1.0,
         -0.20009479, -1.056604],
        dtype=jnp.float32,
    )

    key = jax.random.PRNGKey(0)

    # Small deterministic input: batch=8, features=5 (cartpole swingup state).
    # Force the Pallas path so the kernel is exercised at small shapes.
    x_small = jax.random.normal(key, (8, 5), dtype=jnp.float32)
    r_small = symbolic23_forward(x_small, p, force_pallas=True)
    jax.block_until_ready(r_small)
    assert r_small.shape == (8,)
    assert jnp.allclose(r_small, _reference(x_small, p), rtol=1e-5, atol=1e-5)

    # Non-multiple-of-128 batch, again through the kernel (padding path).
    x_med = jax.random.normal(jax.random.PRNGKey(1), (300, 5), dtype=jnp.float32)
    r_med = symbolic23_forward(x_med, p, force_pallas=True)
    jax.block_until_ready(r_med)
    assert r_med.shape == (300,)
    assert jnp.allclose(r_med, _reference(x_med, p), rtol=1e-5, atol=1e-5)

    # Default (small-batch fallback) path sanity check.
    r_fallback = symbolic23_forward(x_med, p)
    jax.block_until_ready(r_fallback)
    assert jnp.allclose(r_fallback, _reference(x_med, p), rtol=1e-5, atol=1e-5)

    print("KERNEL_OK")
</pallas_src>

<mosaic_0001>
module attributes {stable_mosaic.version = 11 : i64} {
  func.func @_symbolic23_kernel(%arg0: i32, %arg1: memref<8xf32, #tpu.memory_space<smem>>, %arg2: memref<2x8x128xf32, #tpu.memory_space<vmem>>, %arg3: memref<8x128xf32, #tpu.memory_space<vmem>>) attributes {dimension_semantics = [#tpu.dimension_semantics<parallel>], iteration_bounds = array<i64: 1>, scalar_prefetch = 1 : i64, scratch_operands = 0 : i64, tpu.core_type = #tpu.core_type<tc>, window_params = [{transform_indices = @transform_0, window_bounds = array<i64: 2, 8, 128>}, {transform_indices = @transform_1, window_bounds = array<i64: 8, 128>}]} {
    %c0 = arith.constant 0 : index
    %c0_0 = arith.constant 0 : index
    %c0_1 = arith.constant 0 : index
    %0 = vector.load %arg2[%c0, %c0_0, %c0_1] : memref<2x8x128xf32, #tpu.memory_space<vmem>>, vector<1x8x128xf32>
    %1 = vector.shape_cast %0 : vector<1x8x128xf32> to vector<8x128xf32>
    %c1 = arith.constant 1 : index
    %c0_2 = arith.constant 0 : index
    %c0_3 = arith.constant 0 : index
    %2 = vector.load %arg2[%c1, %c0_2, %c0_3] : memref<2x8x128xf32, #tpu.memory_space<vmem>>, vector<1x8x128xf32>
    %3 = vector.shape_cast %2 : vector<1x8x128xf32> to vector<8x128xf32>
    %c0_4 = arith.constant 0 : index
    %4 = memref.load %arg1[%c0_4] : memref<8xf32, #tpu.memory_space<smem>>
    %c1_5 = arith.constant 1 : index
    %5 = memref.load %arg1[%c1_5] : memref<8xf32, #tpu.memory_space<smem>>
    %c2 = arith.constant 2 : index
    %6 = memref.load %arg1[%c2] : memref<8xf32, #tpu.memory_space<smem>>
    %c3 = arith.constant 3 : index
    %7 = memref.load %arg1[%c3] : memref<8xf32, #tpu.memory_space<smem>>
    %c4 = arith.constant 4 : index
    %8 = memref.load %arg1[%c4] : memref<8xf32, #tpu.memory_space<smem>>
    %c5 = arith.constant 5 : index
    %9 = memref.load %arg1[%c5] : memref<8xf32, #tpu.memory_space<smem>>
    %c6 = arith.constant 6 : index
    %10 = memref.load %arg1[%c6] : memref<8xf32, #tpu.memory_space<smem>>
    %c7 = arith.constant 7 : index
    %11 = memref.load %arg1[%c7] : memref<8xf32, #tpu.memory_space<smem>>
    %12 = vector.broadcast %4 : f32 to vector<8x128xf32>
    %13 = arith.mulf %1, %12 : vector<8x128xf32>
    %14 = vector.broadcast %5 : f32 to vector<8x128xf32>
    %15 = arith.addf %13, %14 : vector<8x128xf32>
    %16 = vector.broadcast %6 : f32 to vector<8x128xf32>
    %17 = arith.mulf %16, %3 : vector<8x128xf32>
    %18 = arith.addf %15, %17 : vector<8x128xf32>
    %19 = vector.broadcast %7 : f32 to vector<8x128xf32>
    %20 = arith.mulf %1, %19 : vector<8x128xf32>
    %21 = vector.broadcast %8 : f32 to vector<8x128xf32>
    %22 = arith.mulf %21, %3 : vector<8x128xf32>
    %23 = arith.addf %20, %22 : vector<8x128xf32>
    %24 = vector.broadcast %9 : f32 to vector<8x128xf32>
    %25 = arith.mulf %1, %24 : vector<8x128xf32>
    %26 = vector.broadcast %10 : f32 to vector<8x128xf32>
    %27 = arith.mulf %26, %3 : vector<8x128xf32>
    %28 = arith.addf %25, %27 : vector<8x128xf32>
    %29 = arith.mulf %23, %28 : vector<8x128xf32>
    %30 = vector.broadcast %11 : f32 to vector<8x128xf32>
    %31 = arith.addf %29, %30 : vector<8x128xf32>
    %32 = arith.divf %18, %31 : vector<8x128xf32>
    %c0_6 = arith.constant 0 : index
    %c0_7 = arith.constant 0 : index
    %33 = vector.load %arg3[%c0_6, %c0_7] : memref<8x128xf32, #tpu.memory_space<vmem>>, vector<8x128xf32>
    tpu.vector_store %arg3[%c0_6, %c0_7], %32 {strides = array<i32>} : memref<8x128xf32, #tpu.memory_space<vmem>>, vector<8x128xf32>,
    return
  }
  func.func @transform_0(%arg0: i32, %arg1: memref<8xf32, #tpu.memory_space<smem>>) -> (i32, i32, i32) {
    %c0_i32 = arith.constant 0 : i32
    %c0_i32_0 = arith.constant 0 : i32
    %c0_i32_1 = arith.constant 0 : i32
    return %c0_i32, %arg0, %c0_i32_0 : i32, i32, i32
  }
  func.func @transform_1(%arg0: i32, %arg1: memref<8xf32, #tpu.memory_space<smem>>) -> (i32, i32) {
    %c0_i32 = arith.constant 0 : i32
    %c0_i32_0 = arith.constant 0 : i32
    return %arg0, %c0_i32 : i32, i32
  }
}

</mosaic_0001>

<bundles_post_ra>
// kernel: tpu_custom_call.1
= control target key start
LH: loop header
LB: loop body
LE: loop exit
PB: predicated region body
PF: predicated region fallthrough
CT: control target
= control target key end

     0   :  { %s207_s0 = inlined_call_operand.hbm [shape: f32[8], index: 0, kind: input, shape index: {}]   ;;  %s208_s1 = inlined_call_operand.hbm [shape: f32[2,8,128], index: 1, kind: input, shape index: {}]   ;;  %s209_s2 = inlined_call_operand.hbm [shape: f32[8,128], index: 2, kind: output, shape index: {}]  }
   0x1   :  { %s91_s11 = scalar_lea.hbm %s207_s0, 16 }
   0x2   :  { %p92_p0 = scmp.ne.s32.totalorder %s207_s0, %s91_s11  ;;  %p95_p1 = scmp.lt.u32.totalorder %s91_s11, %s207_s0 }
   0x4   :  { %p97_p2 = pnand %p95_p1, %p92_p0 }
   0x6   :  { %100 = shalt.err (!%p97_p2)  }
   0x7   :  { %s151_s16 = smov [#allocation3]  }
   0x8   :  { %8 = dma.hbm_to_smem %s207_s0, 16, %s151_s16, [#allocation2] }
   0x9   :  { %145 = dma.done.wait [#allocation2], 16 }
   0xa   :  { %146 = vsyncadd [#allocation2], 4294967280 }
   0xb   :  { %10 = sfence }
   0xc   :  { %11 = vsyncpa [#allocation5], 0 }
   0xd   :  { %12 = vsyncpa [#allocation6], 0  ;;  %s152_s19 = smov [#allocation4]   ;;  %s101_s23 = scalar_lea.hbm %s208_s1, 256 }
   0xe   :  { %s18_s20 = sshll.u32 %s152_s19, 4  ;;  %p102_p3 = scmp.ne.s32.totalorder %s208_s1, %s101_s23  ;;  %s19_s20 = int_to_ptr.vmem [resolvable:$true] %s18_s20 }
   0xf   :  { %p105_p4 = scmp.lt.u32.totalorder %s101_s23, %s208_s1 }
  0x11   :  { %p107_p5 = pnand %p105_p4, %p102_p3 }
  0x13   :  { %110 = shalt.err (!%p107_p5)
}
  0x14   :  { %s111_s0 = scalar_lea.vmem %s19_s20, 256  ;;  %p116_p7 = scmp.lt.s32.totalorder %s19_s20, %s19_s20 }
  0x15   :  { %p112_p6 = scmp.ne.s32.totalorder %s19_s20, %s111_s0  ;;  %p117_p8 = scmp.lt.s32.totalorder %s111_s0, %s111_s0 }
  0x17   :  { %p118_p9 = por %p117_p8, %p116_p7 }
  0x19   :  { %p119_p10 = pnand %p118_p9, %p112_p6 }
  0x1b   :  { %122 = shalt.err (!%p119_p10)
}
  0x1c   :  { %s153_s28 = smov 128   ;;  %s154_s29 = smov 8  }
  0x1d   :  { %24 = dma.hbm_to_vmem [thread:$0]  %s208_s1, 256, %s19_s20, [#allocation5], %s153_s28, %s153_s28, %s154_s29  }
  0x1e   :  { %147 = dma.done.wait [#allocation5], 256  }
  0x1f   :  { %148 = vsyncadd [#allocation5], 4294967040  ;;  %s79_s4 = sld [smem:[#allocation3 + $0x3]]  ;;  %s80_s5 = sld [smem:[#allocation3 + $0x4]]  ;;  %v28_v0 = vld [vmem:[#allocation4] sm:$0xff]  ;;  %v30_v1 = vld [vmem:[#allocation4 + $0x8] sm:$0xff] }
  0x20   :  { %s81_s6 = sld [smem:[#allocation3 + $0x5]]  ;;  %s82_s7 = sld [smem:[#allocation3 + $0x6]] }
  0x21   :  { %s83_s8 = sld [smem:[#allocation3 + $0x7]]  ;;  %s31_s9 = sld [smem:[#allocation3]] }
  0x22   :  { %s77_s10 = sld [smem:[#allocation3 + $0x1]]  ;;  %s78_s11 = sld [smem:[#allocation3 + $0x2]] }
  0x23   :  { %s155_s1 = smov [#allocation7]  }
  0x24   :  { %s68_s12 = sshll.u32 %s155_s1, 4  ;;  %s69_s12 = int_to_ptr.vmem [resolvable:$true] %s68_s12 }
  0x25   :  { %v46_v2 = vstv %s79_s4  ;;  %v48_v4 = vstv %s80_s5  ;;  %s123_s13 = scalar_lea.vmem %s69_s12, 128  ;;  %p128_p12 = scmp.lt.s32.totalorder %s69_s12, %s69_s12 }
  0x26   :  { %v47_v3 = vmul.f32 %v46_v2, %v28_v0  ;;  %v51_v5 = vstv %s81_s6  ;;  %v49_v6 = vmul.f32 %v48_v4, %v30_v1  ;;  %v53_v8 = vstv %s82_s7  ;;  %p124_p11 = scmp.ne.s32.totalorder %s69_s12, %s123_s13  ;;  %p129_p13 = scmp.lt.s32.totalorder %s123_s13, %s123_s13 }
  0x27   :  { %v52_v7 = vmul.f32 %v51_v5, %v28_v0  ;;  %v54_v9 = vmul.f32 %v53_v8, %v30_v1  ;;  %v57_v12 = vstv %s83_s8  ;;  %v39_v13 = vstv %s31_s9 }
  0x28   :  { %v50_v10 = vadd.f32 %v49_v6, %v47_v3  ;;  %v40_v16 = vmul.f32 %v39_v13, %v28_v0  ;;  %v41_v17 = vstv %s77_s10  ;;  %v43_v18 = vstv %s78_s11  ;;  %p130_p0 = por %p129_p13, %p128_p12 }
  0x29   :  { %v55_v11 = vadd.f32 %v54_v9, %v52_v7  ;;  %v44_v20 = vmul.f32 %v43_v18, %v30_v1 }
  0x2a   :  { %v42_v19 = vadd.f32 %v41_v17, %v40_v16  ;;  %p131_p1 = pnand %p130_p0, %p124_p11 }
  0x2b   :  { %v56_v14 = vmul.f32 %v55_v11, %v50_v10 }
  0x2c   :  { %v45_v21 = vadd.f32 %v44_v20, %v42_v19 }
  0x2d   :  { %v58_v15 = vadd.f32 %v57_v12, %v56_v14 }
  0x2f   :  { %89 = vrcp.f32 %v58_v15 }
  0x39   :  { %v90_v22 = vpop.eup %89 }
  0x3a   :  { %v60_v23 = vmul.f32 %v90_v22, %v45_v21 }
  0x3c   :  { %61 = vst [vmem:[#allocation7] sm:$0xff] %v60_v23 }
  0x3d   :  { %134 = shalt.err (!%p131_p1)
}
  0x3e   :  { %s135_s16 = scalar_lea.hbm %s209_s2, 128 }
  0x3f   :  { %p136_p2 = scmp.ne.s32.totalorder %s209_s2, %s135_s16  ;;  %p139_p3 = scmp.lt.u32.totalorder %s135_s16, %s209_s2 }
  0x41   :  { %p141_p4 = pnand %p139_p3, %p136_p2 }
  0x43   :  { %144 = shalt.err (!%p141_p4)
}
  0x44   :  { %71 = dma.vmem_to_hbm [thread:$0]  %s69_s12, 128, %s209_s2, [#allocation6]  }
  0x45   :  { %149 = dma.done.wait [#allocation6], 128  }
  0x46   :  { %150 = vsyncadd [#allocation6], 4294967168 }
  0x47   :  { %75 = vsyncpa [#allocation5], 1 }
  0x48   :  { %76 = vsyncpa [#allocation6], 1 }

</bundles_post_ra>
